<compile_context>
chip_gen: v6e
topology: v6e:2x2x1
jax: 0.10.0
libtpu: 0.0.40
codegen_flags: <defaults>
</compile_context>

<pallas_src>
import jax
import jax.numpy as jnp
from jax.experimental import pallas as pl
from jax.experimental.pallas import tpu as pltpu

# --- module hyper-parameters (constants undefined in the source; chosen small) ---
WORD_VEC_SIZE = 16            # -> in_features = 48
ACTION_POOL_SIZE = 8
CODE_SIZE = 50
BN_EPS = 1e-5
DROP_P1 = 0.10
DROP_P2 = 0.05

# Random bits are int32 in [0, 2^31); keep an element iff bits >= p * 2^31.
_DROP1_THRESH = int(DROP_P1 * (1 << 31))
_DROP2_THRESH = int(DROP_P2 * (1 << 31))
# eps adjusted so that skipping the 1/(1-p1) dropout rescale is exact:
#   BN(z/(1-p1), eps) == (z - mean_z) * rsqrt(var_z + eps*(1-p1)^2) * ...
_BN_EPS_ADJ = BN_EPS * (1.0 - DROP_P1) ** 2


def cortex_kernel(rbits_ref,              # int32 [2, B, CODE] dropout bits
                  x_ref,                  # f32 [B, 3*WVS]
                  w1_ref,                 # f32 [3*WVS, CODE]
                  pp_ref,                 # f32 [3, CODE] = (b1, gamma', beta')
                  w2b2_ref,               # f32 [CODE+1, A] = (w2 ; b2)
                  out_ref):               # f32 [B, A]
    x = x_ref[...]

    # ---- encode_layer + ReLU (MXU matmul, f32 accumulation) ----
    b1 = pp_ref[0:1, :]
    h = jnp.dot(x, w1_ref[...], preferred_element_type=jnp.float32) + b1
    h = jnp.maximum(h, 0.0)                                   # [B, CODE]

    # ---- dropout p=0.10 (mask only; 1/(1-p) scale cancels in BN) ----
    keep1 = rbits_ref[0] >= _DROP1_THRESH
    z = jnp.where(keep1, h, 0.0)

    # ---- BatchNorm1d, training mode: batch mean / biased batch var ----
    mean = jnp.mean(z, axis=0, keepdims=True)                 # [1, CODE]
    d = z - mean
    var = jnp.mean(d * d, axis=0, keepdims=True)              # biased
    gamma = pp_ref[1:2, :]   # pre-scaled by 1/(1-p2) in the wrapper
    beta = pp_ref[2:3, :]    # pre-scaled by 1/(1-p2) in the wrapper
    hn = d * jax.lax.rsqrt(var + _BN_EPS_ADJ) * gamma + beta

    # ---- dropout p=0.05 (scale already folded into gamma/beta) ----
    keep2 = rbits_ref[1] >= _DROP2_THRESH
    h2 = jnp.where(keep2, hn, 0.0)

    # ---- predict_layer + tanh ----
    w2 = w2b2_ref[0:CODE_SIZE, :]
    b2 = w2b2_ref[CODE_SIZE:CODE_SIZE + 1, :]
    y = jnp.dot(h2, w2, preferred_element_type=jnp.float32) + b2
    out_ref[...] = jnp.tanh(y)


def cortex_forward(x, params, dropout_key):
    """x: [B, 3*WORD_VEC_SIZE] f32 -> [B, ACTION_POOL_SIZE] f32 (training-mode fwd)."""
    B = x.shape[0]
    w1, b1, gamma, beta, w2, b2 = params

    # Fold the second dropout's 1/(1-p2) rescale into the BN affine (exact).
    inv_keep2 = 1.0 / (1.0 - DROP_P2)
    packed_vec = jnp.concatenate(
        [b1, gamma * inv_keep2, beta * inv_keep2], axis=0)      # [3, CODE]
    w2b2 = jnp.concatenate([w2, b2], axis=0)                    # [CODE+1, A]

    # One random draw for both dropout masks; int32 in [0, 2^31).
    rbits = (jax.random.bits(dropout_key, (2, B, CODE_SIZE), dtype=jnp.uint32)
             >> 1).astype(jnp.int32)

    vmem = pl.BlockSpec(memory_space=pltpu.MemorySpace.VMEM)
    return pl.pallas_call(
        cortex_kernel,
        out_shape=jax.ShapeDtypeStruct((B, ACTION_POOL_SIZE), jnp.float32),
        in_specs=[vmem, vmem, vmem, vmem, vmem],
        out_specs=vmem,
    )(rbits, x, w1, packed_vec, w2b2)


def init_params(key):
    """Deterministic init mirroring nn.Linear / nn.BatchNorm1d defaults."""
    in_feat = WORD_VEC_SIZE * 3
    k1, k2, k3, k4 = jax.random.split(key, 4)

    lim1 = 1.0 / jnp.sqrt(in_feat)
    # weights stored pre-transposed ([in, out]) so the kernel does x @ W
    w1 = jax.random.uniform(k1, (in_feat, CODE_SIZE), jnp.float32, -lim1, lim1)
    b1 = jax.random.uniform(k2, (1, CODE_SIZE), jnp.float32, -lim1, lim1)

    gamma = jnp.ones((1, CODE_SIZE), jnp.float32)   # BatchNorm1d weight init
    beta = jnp.zeros((1, CODE_SIZE), jnp.float32)   # BatchNorm1d bias init

    lim2 = 1.0 / jnp.sqrt(CODE_SIZE)
    w2 = jax.random.uniform(k3, (CODE_SIZE, ACTION_POOL_SIZE), jnp.float32, -lim2, lim2)
    b2 = jax.random.uniform(k4, (1, ACTION_POOL_SIZE), jnp.float32, -lim2, lim2)

    return (w1, b1, gamma, beta, w2, b2)


# TODO(synk): BatchNorm1d running_mean/running_var updates (training-step side
# effect) are not emitted; only the normalized forward output is produced.

if __name__ == "__main__":
    key = jax.random.PRNGKey(0)
    kp, kx, kd = jax.random.split(key, 3)

    params = init_params(kp)

    B = 8
    x = jax.random.normal(kx, (B, WORD_VEC_SIZE * 3), jnp.float32)

    out = cortex_forward(x, params, dropout_key=kd)
    out = jax.block_until_ready(out)

    assert out.shape == (B, ACTION_POOL_SIZE)
    assert bool(jnp.all(jnp.isfinite(out)))
    assert bool(jnp.all(jnp.abs(out) <= 1.0))   # tanh range
    print("KERNEL_OK")
</pallas_src>

<mosaic_0001>
module attributes {stable_mosaic.version = 11 : i64} {
  func.func @cortex_kernel(%arg0: memref<2x8x50xi32, #tpu.memory_space<vmem>>, %arg1: memref<8x48xf32, #tpu.memory_space<vmem>>, %arg2: memref<48x50xf32, #tpu.memory_space<vmem>>, %arg3: memref<3x50xf32, #tpu.memory_space<vmem>>, %arg4: memref<51x8xf32, #tpu.memory_space<vmem>>, %arg5: memref<8x8xf32, #tpu.memory_space<vmem>>) attributes {dimension_semantics = [], scalar_prefetch = 0 : i64, scratch_operands = 0 : i64, tpu.core_type = #tpu.core_type<tc>} {
    %c0 = arith.constant 0 : index
    %c0_0 = arith.constant 0 : index
    %0 = vector.load %arg1[%c0, %c0_0] : memref<8x48xf32, #tpu.memory_space<vmem>>, vector<8x48xf32>
    %c0_1 = arith.constant 0 : index
    %c0_2 = arith.constant 0 : index
    %1 = vector.load %arg3[%c0_1, %c0_2] : memref<3x50xf32, #tpu.memory_space<vmem>>, vector<1x50xf32>
    %c0_3 = arith.constant 0 : index
    %c0_4 = arith.constant 0 : index
    %2 = vector.load %arg2[%c0_3, %c0_4] : memref<48x50xf32, #tpu.memory_space<vmem>>, vector<48x50xf32>
    %cst = arith.constant dense<0.000000e+00> : vector<8x50xf32>
    %3 = tpu.matmul %0, %2, %cst {dimension_numbers = #tpu.dot_dimension_numbers<[1], [0], [0], [1], [0, 0, 1, 1], [], []>} : vector<8x48xf32>, vector<48x50xf32>, vector<8x50xf32> -> vector<8x50xf32>
    %4 = vector.broadcast %1 : vector<1x50xf32> to vector<8x50xf32>
    %5 = arith.addf %3, %4 : vector<8x50xf32>
    %cst_5 = arith.constant 0.000000e+00 : f32
    %6 = vector.broadcast %cst_5 : f32 to vector<8x50xf32>
    %7 = arith.maximumf %5, %6 : vector<8x50xf32>
    %c0_6 = arith.constant 0 : index
    %c0_7 = arith.constant 0 : index
    %c0_8 = arith.constant 0 : index
    %8 = vector.load %arg0[%c0_6, %c0_7, %c0_8] : memref<2x8x50xi32, #tpu.memory_space<vmem>>, vector<1x8x50xi32>
    %9 = vector.shape_cast %8 : vector<1x8x50xi32> to vector<8x50xi32>
    %c214748364_i32 = arith.constant 214748364 : i32
    %10 = vector.broadcast %c214748364_i32 : i32 to vector<8x50xi32>
    %11 = arith.cmpi sge, %9, %10 : vector<8x50xi32>
    %cst_9 = arith.constant 0.000000e+00 : f32
    %12 = vector.broadcast %cst_9 : f32 to vector<8x50xf32>
    %13 = arith.select %11, %7, %12 : vector<8x50xi1>, vector<8x50xf32>
    %cst_10 = arith.constant dense<0.000000e+00> : vector<50xf32>
    %14 = vector.multi_reduction <add>, %13, %cst_10 [0] : vector<8x50xf32> to vector<50xf32>
    %15 = vector.shape_cast %14 : vector<50xf32> to vector<1x50xf32>
    %cst_11 = arith.constant 8.000000e+00 : f32
    %16 = vector.broadcast %cst_11 : f32 to vector<1x50xf32>
    %17 = arith.divf %15, %16 : vector<1x50xf32>
    %18 = vector.broadcast %17 : vector<1x50xf32> to vector<8x50xf32>
    %19 = arith.subf %13, %18 : vector<8x50xf32>
    %20 = arith.mulf %19, %19 : vector<8x50xf32>
    %cst_12 = arith.constant dense<0.000000e+00> : vector<50xf32>
    %21 = vector.multi_reduction <add>, %20, %cst_12 [0] : vector<8x50xf32> to vector<50xf32>
    %22 = vector.shape_cast %21 : vector<50xf32> to vector<1x50xf32>
    %cst_13 = arith.constant 8.000000e+00 : f32
    %23 = vector.broadcast %cst_13 : f32 to vector<1x50xf32>
    %24 = arith.divf %22, %23 : vector<1x50xf32>
    %c1 = arith.constant 1 : index
    %c0_14 = arith.constant 0 : index
    %25 = vector.load %arg3[%c1, %c0_14] : memref<3x50xf32, #tpu.memory_space<vmem>>, vector<1x50xf32>
    %c2 = arith.constant 2 : index
    %c0_15 = arith.constant 0 : index
    %26 = vector.load %arg3[%c2, %c0_15] : memref<3x50xf32, #tpu.memory_space<vmem>>, vector<1x50xf32>
    %cst_16 = arith.constant 8.09999983E-6 : f32
    %27 = vector.broadcast %cst_16 : f32 to vector<1x50xf32>
    %28 = arith.addf %24, %27 : vector<1x50xf32>
    %29 = math.rsqrt %28 : vector<1x50xf32>
    %30 = vector.broadcast %29 : vector<1x50xf32> to vector<8x50xf32>
    %31 = arith.mulf %19, %30 : vector<8x50xf32>
    %32 = vector.broadcast %25 : vector<1x50xf32> to vector<8x50xf32>
    %33 = arith.mulf %31, %32 : vector<8x50xf32>
    %34 = vector.broadcast %26 : vector<1x50xf32> to vector<8x50xf32>
    %35 = arith.addf %33, %34 : vector<8x50xf32>
    %c1_17 = arith.constant 1 : index
    %c0_18 = arith.constant 0 : index
    %c0_19 = arith.constant 0 : index
    %36 = vector.load %arg0[%c1_17, %c0_18, %c0_19] : memref<2x8x50xi32, #tpu.memory_space<vmem>>, vector<1x8x50xi32>
    %37 = vector.shape_cast %36 : vector<1x8x50xi32> to vector<8x50xi32>
    %c107374182_i32 = arith.constant 107374182 : i32
    %38 = vector.broadcast %c107374182_i32 : i32 to vector<8x50xi32>
    %39 = arith.cmpi sge, %37, %38 : vector<8x50xi32>
    %cst_20 = arith.constant 0.000000e+00 : f32
    %40 = vector.broadcast %cst_20 : f32 to vector<8x50xf32>
    %41 = arith.select %39, %35, %40 : vector<8x50xi1>, vector<8x50xf32>
    %c0_21 = arith.constant 0 : index
    %c0_22 = arith.constant 0 : index
    %42 = vector.load %arg4[%c0_21, %c0_22] : memref<51x8xf32, #tpu.memory_space<vmem>>, vector<50x8xf32>
    %c50 = arith.constant 50 : index
    %c0_23 = arith.constant 0 : index
    %43 = vector.load %arg4[%c50, %c0_23] : memref<51x8xf32, #tpu.memory_space<vmem>>, vector<1x8xf32>
    %cst_24 = arith.constant dense<0.000000e+00> : vector<8x8xf32>
    %44 = tpu.matmul %41, %42, %cst_24 {dimension_numbers = #tpu.dot_dimension_numbers<[1], [0], [0], [1], [0, 0, 1, 1], [], []>} : vector<8x50xf32>, vector<50x8xf32>, vector<8x8xf32> -> vector<8x8xf32>
    %45 = vector.broadcast %43 : vector<1x8xf32> to vector<8x8xf32>
    %46 = arith.addf %44, %45 : vector<8x8xf32>
    %47 = math.tanh %46 : vector<8x8xf32>
    %c0_25 = arith.constant 0 : index
    %c0_26 = arith.constant 0 : index
    %48 = vector.load %arg5[%c0_25, %c0_26] : memref<8x8xf32, #tpu.memory_space<vmem>>, vector<8x8xf32>
    tpu.vector_store %arg5[%c0_25, %c0_26], %47 {strides = array<i32>} : memref<8x8xf32, #tpu.memory_space<vmem>>, vector<8x8xf32>,
    return
  }
}

</mosaic_0001>

<bundles_post_ra>
// kernel: tpu_custom_call.1
= control target key start
LH: loop header
LB: loop body
LE: loop exit
PB: predicated region body
PF: predicated region fallthrough
CT: control target
= control target key end

     0   :  { %10 = vsyncpa [#allocation3], 0  ;;  %s476_s0 = inlined_call_operand.vmem [shape: s32[2,8,50], index: 0, kind: input, shape index: {}]   ;;  %s477_s1 = inlined_call_operand.hbm [shape: f32[8,48], index: 1, kind: input, shape index: {}]   ;;  %s478_s2 = inlined_call_operand.vmem [shape: f32[48,50], index: 2, kind: input, shape index: {}]   ;;  %s479_s3 = inlined_call_operand.vmem [shape: f32[3,50], index: 3, kind: input, shape index: {}]   ;;  %s480_s4 = inlined_call_operand.vmem [shape: f32[51,8], index: 4, kind: input, shape index: {}]   ;;  %s481_s5 = inlined_call_operand.hbm [shape: f32[8,8], index: 5, kind: output, shape index: {}]  }
   0x1   :  { %11 = vsyncpa [#allocation4], 0  ;;  %s376_s18 = smov [#allocation2]  }
   0x2   :  { %s20_s19 = sshll.u32 %s376_s18, 4  ;;  %s21_s19 = int_to_ptr.vmem [resolvable:$true] %s20_s19 }
   0x3   :  { %s340_s20 = scalar_lea.vmem %s21_s19, 128  ;;  %p345_p1 = scmp.lt.s32.totalorder %s21_s19, %s21_s19 }
   0x4   :  { %p341_p0 = scmp.ne.s32.totalorder %s21_s19, %s340_s20  ;;  %p346_p2 = scmp.lt.s32.totalorder %s340_s20, %s340_s20 }
   0x6   :  { %p347_p3 = por %p346_p2, %p345_p1 }
   0x8   :  { %p348_p4 = pnand %p347_p3, %p341_p0 }
   0xa   :  { %351 = shalt.err (!%p348_p4)
}
   0xb   :  { %23 = dma.hbm_to_vmem [thread:$0]  %s477_s1, 128, %s21_s19, [#allocation3]  }
   0xc   :  { %372 = dma.done.wait [#allocation3], 128  }
   0xd   :  { %373 = vsyncadd [#allocation3], 4294967168  ;;  %v377_v0 = vmov 0.0   ;;  %vm378_vm0 = vmmov 0   ;;  %v40_v1 = vld [vmem:[%s478_s2 + $0x28] sm:$0xff]  ;;  %v39_v2 = vld [vmem:[%s478_s2 + $0x20] sm:$0xff] }
   0xe   :  { %292 = vmatprep.subr.mxu0 %v377_v0  ;;  %304 = vmatprep.mubr.msk.f32.mxu0 %vm378_vm0, %v377_v0  ;;  %v38_v3 = vld [vmem:[%s478_s2 + $0x18] sm:$0xff]  ;;  %v37_v4 = vld [vmem:[%s478_s2 + $0x10] sm:$0xff]  ;;  %v36_v5 = vld [vmem:[%s478_s2 + $0x8] sm:$0xff]  ;;  %vm45_vm1 = vcmask 392192   ;;  %vm177_vm2 = vcmask 1041408   ;;  %vm123_vm4 = vcmask 408576  }
   0xf   :  { %307 = vmatprep.subr.mxu1 %v377_v0  ;;  %321 = vmatprep.mubr.msk.f32.mxu1 %vm378_vm0, %v377_v0  ;;  %v35_v6 = vld [vmem:[%s478_s2] sm:$0xff]  ;;  %v168_v8 = vld [vmem:[%s480_s4 + $0x30] sm:$0x3]  ;;  %v167_v9 = vld [vmem:[%s480_s4 + $0x28] sm:$0xff]  ;;  %s379_s8 = smov [#allocation5]   ;;  %vm252_vm6 = vcmask 64512  }
  0x10   :  { %293 = vmatpush3.msra.mxu0 %v40_v1  ;;  %v33_v7 = vld [vmem:[#allocation2] sm:$0xff]  ;;  %308 = vmatpush3.msk.msra.mxu1 %vm177_vm2, %v168_v8  ;;  %v165_v11 = vld [vmem:[%s480_s4 + $0x18] sm:$0xff]  ;;  %v164_v12 = vld [vmem:[%s480_s4 + $0x10] sm:$0xff] }
  0x11   :  { %294 = vmatprep.subr.mxu0 %v377_v0  ;;  %309 = vmatprep.subr.mxu1 %v377_v0  ;;  %v166_v10 = vld [vmem:[%s480_s4 + $0x20] sm:$0xff]  ;;  %v163_v13 = vld [vmem:[%s480_s4 + $0x8] sm:$0xff]  ;;  %v274_v49 = vld [vmem:[%s480_s4 + $0x32] ss:$0 sm:$0xff] }
  0x12   :  { %295 = vmatpush3.msra.mxu0 %v39_v2  ;;  %310 = vmatpush3.msra.mxu1 %v167_v9  ;;  %v162_v14 = vld [vmem:[%s480_s4] sm:$0xff]  ;;  %v273_v44 = vld [vmem:[%s476_s0 + $0x8] sm:$0xff] }
  0x13   :  { %296 = vmatprep.subr.mxu0 %v377_v0  ;;  %311 = vmatprep.subr.mxu1 %v377_v0  ;;  %v269_v15 = vld [vmem:[%s479_s3] ss:$0 sm:$0xff]  ;;  %v271_v42 = vld [vmem:[%s479_s3 + $0x1] ss:$0 sm:$0xff]  ;;  %v272_v45 = vld [vmem:[%s479_s3 + $0x2] ss:$0 sm:$0xff] }
  0x14   :  { %297 = vmatpush3.msra.mxu0 %v38_v3  ;;  %312 = vmatpush3.msra.mxu1 %v166_v10  ;;  %v120_v16 = vld [vmem:[%s476_s0] sm:$0xff]  ;;  %vm160_vm5 = vcmp.ge.s32.totalorder %v273_v44, 107374182  ;;  %s260_s0 = sshll.u32 %s379_s8, 4  ;;  %s261_s0 = int_to_ptr.vmem [resolvable:$true] %s260_s0 }
  0x15   :  { %298 = vmatprep.subr.mxu0 %v377_v0  ;;  %313 = vmatprep.subr.mxu1 %v377_v0  ;;  %vm121_vm3 = vcmp.ge.s32.totalorder %v120_v16, 214748364  ;;  %s352_s3 = scalar_lea.vmem %s261_s0, 128  ;;  %p357_p6 = scmp.lt.s32.totalorder %s261_s0, %s261_s0 }
  0x16   :  { %299 = vmatpush3.msra.mxu0 %v37_v4  ;;  %314 = vmatpush3.msra.mxu1 %v165_v11  ;;  %p353_p5 = scmp.ne.s32.totalorder %s261_s0, %s352_s3  ;;  %p358_p7 = scmp.lt.s32.totalorder %s352_s3, %s352_s3 }
  0x17   :  { %300 = vmatprep.subr.mxu0 %v377_v0  ;;  %315 = vmatprep.subr.mxu1 %v377_v0 }
  0x18   :  { %301 = vmatpush3.msra.mxu0 %v36_v5  ;;  %316 = vmatpush3.msra.mxu1 %v164_v12  ;;  %p359_p8 = por %p358_p7, %p357_p6 }
  0x19   :  { %302 = vmatprep.subr.mxu0 %v377_v0  ;;  %317 = vmatprep.subr.mxu1 %v377_v0 }
  0x1a   :  { %303 = vmatpush3.msra.mxu0 %v35_v6  ;;  %318 = vmatpush3.msra.mxu1 %v163_v13  ;;  %p360_p9 = pnand %p359_p8, %p353_p5 }
  0x1b   :  { %305 = vmatmul.mubr.msk.f32.vlgmr.msra.gmra.mxu0 %vm45_vm1, %v33_v7  ;;  %319 = vmatprep.subr.mxu1 %v377_v0 }
  0x1c   :  { %320 = vmatpush3.msra.mxu1 %v162_v14 }
  0xdb   :  { %v115_v17 = vpop.f32.mrf.mxu0 }
  0xdc   :  { %v116_v18 = vadd.f32 %v269_v15, %v115_v17 }
  0xdd   :  { %v306_v19 = vpop.f32.mrf.mxu0 }
  0xde   :  { %v119_v20 = vmax.f32 %v116_v18, 0.0 }
  0xe0   :  { %v122_v21 = vsel %vm121_vm3, %v119_v20, 0.0 }
  0xe1   :  { %v124_v22 = vsel %vm123_vm4, %v122_v21, 0.0 }
  0xe2   :  { %v125_v23 = vrot.slane %v124_v22, 4 }
  0xe4   :  { %v126_v24 = vadd.f32 %v125_v23, %v124_v22 }
  0xe6   :  { %v127_v25 = vrot.slane %v126_v24, 2 }
  0xe8   :  { %v128_v26 = vadd.f32 %v127_v25, %v126_v24 }
  0xea   :  { %v129_v27 = vrot.slane %v128_v26, 1 }
  0xec   :  { %v130_v28 = vadd.f32 %v129_v27, %v128_v26 }
  0xee   :  { %v132_v29 = vmul.f32 0.125, %v130_v28 }
  0xf0   :  { %v133_v30 = vsub.f32 %v122_v21, %v132_v29 }
  0xf2   :  { %v134_v31 = vmul.f32 %v133_v30, %v133_v30 }
  0xf4   :  { %v135_v32 = vsel %vm123_vm4, %v134_v31, 0.0 }
  0xf5   :  { %v136_v33 = vrot.slane %v135_v32, 4 }
  0xf7   :  { %v137_v34 = vadd.f32 %v136_v33, %v135_v32 }
  0xf9   :  { %v138_v35 = vrot.slane %v137_v34, 2 }
  0xfb   :  { %v139_v36 = vadd.f32 %v138_v35, %v137_v34 }
  0xfd   :  { %v140_v37 = vrot.slane %v139_v36, 1 }
  0xff   :  { %v141_v38 = vadd.f32 %v140_v37, %v139_v36 }
 0x101   :  { %v142_v39 = vmul.f32 0.125, %v141_v38 }
 0x103   :  { %v145_v40 = vadd.f32 8.1e-06, %v142_v39 }
 0x105   :  { %328 = vrsqrt.f32 %v145_v40 }
 0x112   :  { %v329_v41 = vpop.eup %328 }
 0x113   :  { %v147_v43 = vmul.f32 %v329_v41, %v133_v30 }
 0x115   :  { %v152_v46 = vmul.f32 %v271_v42, %v147_v43 }
 0x117   :  { %v157_v47 = vadd.f32 %v272_v45, %v152_v46 }
 0x119   :  { %v161_v48 = vsel %vm160_vm5, %v157_v47, 0.0 }
 0x11a   :  { %322 = vmatmul.mubr.msk.f32.vlgmr.msra.gmra.mxu1 %vm123_vm4, %v161_v48 }
 0x1da   :  { %v247_v50 = vpop.f32.mrf.mxu1 }
 0x1db   :  { %v248_v51 = vadd.f32 %v274_v49, %v247_v50 }
 0x1dc   :  { %v323_v52 = vpop.f32.mrf.mxu1 }
 0x1dd   :  { %330 = vtanh.f32 %v248_v51 }
 0x1ea   :  { %v331_v53 = vpop.eup %330 }
 0x1eb   :  { %253 = vst.msk [vmem:[#allocation5] sm:$0xff] %vm252_vm6, %v331_v53 }
 0x1ec   :  { %363 = shalt.err (!%p360_p9)
}
 0x1ed   :  { %263 = dma.vmem_to_hbm [thread:$0]  %s261_s0, 128, %s481_s5, [#allocation4]  }
 0x1ee   :  { %374 = dma.done.wait [#allocation4], 128  }
 0x1ef   :  { %375 = vsyncadd [#allocation4], 4294967168 }
 0x1f0   :  { %267 = vsyncpa [#allocation3], 1 }
 0x1f1   :  { %268 = vsyncpa [#allocation4], 1 }

</bundles_post_ra>
